<compile_context>
chip_gen: v7x
topology: tpu7x:2x2x1
jax: 0.10.0
libtpu: 0.0.40
codegen_flags: <defaults>
</compile_context>

<pallas_src>
import functools

import jax
import jax.numpy as jnp
import numpy as np
from jax import lax
from jax.experimental import pallas as pl
from jax.experimental.pallas import tpu as pltpu


def _round_up(x, m):
    return (x + m - 1) // m * m


def _ffm_kernel(xf_ref, xi_ref, w1_ref, w2i_ref, bias_ref, mask_ref, out_ref, *, H, W):
    """One batch element, channels-on-sublanes / flattened-spatial-on-lanes.

    xf_ref  : (1, Cfp, N)        fuse input, channels zero-padded to a multiple of 8
    xi_ref  : (1, Cip, N)        identity input, channels zero-padded to a multiple of 8
    w1_ref  : (Co, 9*Cfp)  bf16  conv1 weight, BN1 scale folded in, im2col column order
    w2i_ref : (Co, 9*Co+Cip) bf16  [conv2 weight * BN2 scale | 1x1 identity weight]
    bias_ref: (Co, 2)  f32       column 0: BN1 shift, column 1: BN2 shift + identity bias
    mask_ref: (9, N)   f32       per-tap validity mask (realizes the zero padding)
    out_ref : (1, Co, N) f32     lane-dense output
    """
    N = H * W
    mask = mask_ref[...]                                    # (9, N)

    def im2col(x):                                          # x: (C, N) f32
        cols = []
        t = 0
        for dh in (-1, 0, 1):
            for dw in (-1, 0, 1):
                if dh == 0 and dw == 0:
                    cols.append(x)                          # centre tap: always valid
                else:
                    s = dh * W + dw
                    shifted = pltpu.roll(x, (-s) % N, 1)    # XLU lane rotation
                    cols.append(shifted * mask[t:t + 1, :])
                t += 1
        return jnp.concatenate(cols, axis=0)                # (9*C, N)

    # ---- conv1 (3x3, pad=1) + BN1 + ReLU : single MXU matmul, K = 9*Cfp -------------
    p1 = im2col(xf_ref[0]).astype(jnp.bfloat16)
    a1 = jnp.dot(w1_ref[...], p1, preferred_element_type=jnp.float32)   # (Co, N)
    h1 = jnp.maximum(a1 + bias_ref[:, 0:1], 0.0)

    # ---- conv2 (3x3, pad=1) + BN2 fused with the 1x1 identity conv: K = 9*Co + Cip --
    p2 = jnp.concatenate([im2col(h1), xi_ref[0]], axis=0).astype(jnp.bfloat16)
    a2 = jnp.dot(w2i_ref[...], p2, preferred_element_type=jnp.float32)  # (Co, N)
    out_ref[0] = jnp.maximum(a2 + bias_ref[:, 1:2], 0.0)


def feature_fusion_pallas(c_fuse, c, p, eps=1e-5):
    """c_fuse: (B, fuse_d, H, W) f32 NCHW; c: (B, id_d, H, W) f32 NCHW.

    Weights use PyTorch layouts: w1/w2 are OIHW, wi is (Co, Ci).
    """
    B, Cf, H, W = c_fuse.shape
    Ci = c.shape[1]
    Co = p["w1"].shape[0]
    N = H * W
    Cfp = _round_up(Cf, 8)
    Cip = _round_up(Ci, 8)

    # ---- fold eval-mode BN into conv weights / biases (wrapper-side, tiny) ----------
    s1 = p["gamma1"] / jnp.sqrt(p["var1"] + eps)
    t1 = (p["b1"] - p["mean1"]) * s1 + p["beta1"]
    s2 = p["gamma2"] / jnp.sqrt(p["var2"] + eps)
    t2 = (p["b2"] - p["mean2"]) * s2 + p["beta2"]

    # conv1 weight (Co, Cf, 3, 3) -> (Co, 9*Cfp); column order = tap-major, channel-minor
    w1m = jnp.transpose(p["w1"], (0, 2, 3, 1))                          # (Co, 3, 3, Cf)
    w1m = jnp.pad(w1m, ((0, 0), (0, 0), (0, 0), (0, Cfp - Cf)))
    w1m = (w1m.reshape(Co, 9 * Cfp) * s1[:, None]).astype(jnp.bfloat16)

    # conv2 weight folded with BN2 scale, concatenated with the 1x1 identity weight
    w2m = jnp.transpose(p["w2"], (0, 2, 3, 1)).reshape(Co, 9 * Co) * s2[:, None]
    wim = jnp.pad(p["wi"], ((0, 0), (0, Cip - Ci)))                     # (Co, Cip)
    w2i = jnp.concatenate([w2m, wim], axis=1).astype(jnp.bfloat16)      # (Co, 9*Co+Cip)

    bias = jnp.stack([t1, t2 + p["bi"]], axis=1).astype(jnp.float32)    # (Co, 2)

    # ---- per-tap validity masks (implement the 3x3 SAME zero padding) ---------------
    idx = jnp.arange(N)
    hh, ww = idx // W, idx % W
    mask = jnp.stack(
        [((hh + dh >= 0) & (hh + dh < H) & (ww + dw >= 0) & (ww + dw < W))
         for dh in (-1, 0, 1) for dw in (-1, 0, 1)]
    ).astype(jnp.float32)                                               # (9, N)

    # ---- activations: free NCHW -> (B, C, H*W) reshape, pad channels to x8 ----------
    xf = c_fuse.reshape(B, Cf, N)
    if Cfp != Cf:
        xf = jnp.pad(xf, ((0, 0), (0, Cfp - Cf), (0, 0)))
    xi = c.reshape(B, Ci, N)
    if Cip != Ci:
        xi = jnp.pad(xi, ((0, 0), (0, Cip - Ci), (0, 0)))

    kernel = functools.partial(_ffm_kernel, H=H, W=W)

    out = pl.pallas_call(
        kernel,
        out_shape=jax.ShapeDtypeStruct((B, Co, N), jnp.float32),
        grid=(B,),
        in_specs=[
            pl.BlockSpec((1, Cfp, N), lambda b: (b, 0, 0)),   # xf
            pl.BlockSpec((1, Cip, N), lambda b: (b, 0, 0)),   # xi
            pl.BlockSpec((Co, 9 * Cfp), lambda b: (0, 0)),    # w1 (folded)
            pl.BlockSpec((Co, 9 * Co + Cip), lambda b: (0, 0)),  # [w2|wi] (folded)
            pl.BlockSpec((Co, 2), lambda b: (0, 0)),          # biases
            pl.BlockSpec((9, N), lambda b: (0, 0)),           # tap masks
        ],
        out_specs=pl.BlockSpec((1, Co, N), lambda b: (b, 0, 0)),
        compiler_params=pltpu.CompilerParams(dimension_semantics=("parallel",)),
    )(xf, xi, w1m, w2i, bias, mask)

    return out.reshape(B, Co, H, W)


def feature_fusion_reference(c_fuse, c, p, eps=1e-5):
    """Pure-JAX reference (eval-mode BN), NCHW / OIHW like PyTorch."""
    hp = lax.Precision.HIGHEST
    dn = ("NCHW", "OIHW", "NCHW")
    bc = lambda v: v[None, :, None, None]

    y = lax.conv_general_dilated(c_fuse, p["w1"], (1, 1), "SAME",
                                 dimension_numbers=dn, precision=hp) + bc(p["b1"])
    y = (y - bc(p["mean1"])) * bc(p["gamma1"] / jnp.sqrt(p["var1"] + eps)) + bc(p["beta1"])
    y = jnp.maximum(y, 0.0)
    y = lax.conv_general_dilated(y, p["w2"], (1, 1), "SAME",
                                 dimension_numbers=dn, precision=hp) + bc(p["b2"])
    y = (y - bc(p["mean2"])) * bc(p["gamma2"] / jnp.sqrt(p["var2"] + eps)) + bc(p["beta2"])

    wi4 = p["wi"][:, :, None, None]
    ident = lax.conv_general_dilated(c, wi4, (1, 1), "SAME",
                                     dimension_numbers=dn, precision=hp) + bc(p["bi"])
    return jnp.maximum(y + ident, 0.0)


if __name__ == "__main__":
    B, H, W = 2, 16, 16
    fuse_d, id_d, out_d = 6, 4, 8

    key = jax.random.PRNGKey(0)
    ks = jax.random.split(key, 8)
    c_fuse = jax.random.normal(ks[0], (B, fuse_d, H, W), jnp.float32)
    c = jax.random.normal(ks[1], (B, id_d, H, W), jnp.float32)

    ar = lambda n: jnp.arange(n, dtype=jnp.float32)
    params = dict(
        w1=0.1 * jax.random.normal(ks[2], (out_d, fuse_d, 3, 3), jnp.float32),
        b1=0.1 * jax.random.normal(ks[3], (out_d,), jnp.float32),
        w2=0.1 * jax.random.normal(ks[4], (out_d, out_d, 3, 3), jnp.float32),
        b2=0.1 * jax.random.normal(ks[5], (out_d,), jnp.float32),
        wi=0.1 * jax.random.normal(ks[6], (out_d, id_d), jnp.float32),
        bi=0.1 * jax.random.normal(ks[7], (out_d,), jnp.float32),
        gamma1=1.0 + 0.10 * ar(out_d), beta1=0.05 * ar(out_d),
        mean1=0.01 * ar(out_d), var1=1.0 + 0.02 * ar(out_d),
        gamma2=1.0 - 0.05 * ar(out_d), beta2=-0.03 * ar(out_d),
        mean2=0.02 * ar(out_d), var2=1.0 + 0.03 * ar(out_d),
    )

    out = feature_fusion_pallas(c_fuse, c, params)
    out = jax.block_until_ready(out)
    assert out.shape == (B, out_d, H, W)

    ref = feature_fusion_reference(c_fuse, c, params)
    np.testing.assert_allclose(np.asarray(out), np.asarray(ref), rtol=5e-2, atol=5e-2)

    print("KERNEL_OK")
</pallas_src>

<mosaic_0001>
module attributes {stable_mosaic.version = 11 : i64} {
  func.func @_ffm_kernel(%arg0: i32, %arg1: memref<1x8x256xf32, #tpu.memory_space<vmem>>, %arg2: memref<1x8x256xf32, #tpu.memory_space<vmem>>, %arg3: memref<8x72xbf16, #tpu.memory_space<vmem>>, %arg4: memref<8x80xbf16, #tpu.memory_space<vmem>>, %arg5: memref<8x2xf32, #tpu.memory_space<vmem>>, %arg6: memref<9x256xf32, #tpu.memory_space<vmem>>, %arg7: memref<1x8x256xf32, #tpu.memory_space<vmem>>) attributes {dimension_semantics = [#tpu.dimension_semantics<parallel>], iteration_bounds = array<i64: 2>, scalar_prefetch = 0 : i64, scratch_operands = 0 : i64, tpu.core_type = #tpu.core_type<tc>, window_params = [{transform_indices = @transform_0, window_bounds = array<i64: 1, 8, 256>}, {transform_indices = @transform_1, window_bounds = array<i64: 1, 8, 256>}, {pipeline_mode = #tpu.pipeline_mode<synchronous>, transform_indices = @transform_2, window_bounds = array<i64: 8, 72>}, {pipeline_mode = #tpu.pipeline_mode<synchronous>, transform_indices = @transform_3, window_bounds = array<i64: 8, 80>}, {pipeline_mode = #tpu.pipeline_mode<synchronous>, transform_indices = @transform_4, window_bounds = array<i64: 8, 2>}, {pipeline_mode = #tpu.pipeline_mode<synchronous>, transform_indices = @transform_5, window_bounds = array<i64: 9, 256>}, {transform_indices = @transform_6, window_bounds = array<i64: 1, 8, 256>}]} {
    %c0 = arith.constant 0 : index
    %c0_0 = arith.constant 0 : index
    %0 = vector.load %arg6[%c0, %c0_0] : memref<9x256xf32, #tpu.memory_space<vmem>>, vector<9x256xf32>
    %c0_1 = arith.constant 0 : index
    %c0_2 = arith.constant 0 : index
    %c0_3 = arith.constant 0 : index
    %1 = vector.load %arg1[%c0_1, %c0_2, %c0_3] : memref<1x8x256xf32, #tpu.memory_space<vmem>>, vector<1x8x256xf32>
    %2 = vector.shape_cast %1 : vector<1x8x256xf32> to vector<8x256xf32>
    %c17_i32 = arith.constant 17 : i32
    %3 = tpu.dynamic_rotate %2 by %c17_i32 dim 1 : vector<8x256xf32>, i32 -> vector<8x256xf32>
    %4 = vector.extract_strided_slice %0 {offsets = [0, 0], sizes = [1, 256], strides = [1, 1]} : vector<9x256xf32> to vector<1x256xf32>
    %5 = vector.broadcast %4 : vector<1x256xf32> to vector<8x256xf32>
    %6 = arith.mulf %3, %5 : vector<8x256xf32>
    %c16_i32 = arith.constant 16 : i32
    %7 = tpu.dynamic_rotate %2 by %c16_i32 dim 1 : vector<8x256xf32>, i32 -> vector<8x256xf32>
    %8 = vector.extract_strided_slice %0 {offsets = [1, 0], sizes = [1, 256], strides = [1, 1]} : vector<9x256xf32> to vector<1x256xf32>
    %9 = vector.broadcast %8 : vector<1x256xf32> to vector<8x256xf32>
    %10 = arith.mulf %7, %9 : vector<8x256xf32>
    %c15_i32 = arith.constant 15 : i32
    %11 = tpu.dynamic_rotate %2 by %c15_i32 dim 1 : vector<8x256xf32>, i32 -> vector<8x256xf32>
    %12 = vector.extract_strided_slice %0 {offsets = [2, 0], sizes = [1, 256], strides = [1, 1]} : vector<9x256xf32> to vector<1x256xf32>
    %13 = vector.broadcast %12 : vector<1x256xf32> to vector<8x256xf32>
    %14 = arith.mulf %11, %13 : vector<8x256xf32>
    %c1_i32 = arith.constant 1 : i32
    %15 = tpu.dynamic_rotate %2 by %c1_i32 dim 1 : vector<8x256xf32>, i32 -> vector<8x256xf32>
    %16 = vector.extract_strided_slice %0 {offsets = [3, 0], sizes = [1, 256], strides = [1, 1]} : vector<9x256xf32> to vector<1x256xf32>
    %17 = vector.broadcast %16 : vector<1x256xf32> to vector<8x256xf32>
    %18 = arith.mulf %15, %17 : vector<8x256xf32>
    %c255_i32 = arith.constant 255 : i32
    %19 = tpu.dynamic_rotate %2 by %c255_i32 dim 1 : vector<8x256xf32>, i32 -> vector<8x256xf32>
    %20 = vector.extract_strided_slice %0 {offsets = [5, 0], sizes = [1, 256], strides = [1, 1]} : vector<9x256xf32> to vector<1x256xf32>
    %21 = vector.broadcast %20 : vector<1x256xf32> to vector<8x256xf32>
    %22 = arith.mulf %19, %21 : vector<8x256xf32>
    %c241_i32 = arith.constant 241 : i32
    %23 = tpu.dynamic_rotate %2 by %c241_i32 dim 1 : vector<8x256xf32>, i32 -> vector<8x256xf32>
    %24 = vector.extract_strided_slice %0 {offsets = [6, 0], sizes = [1, 256], strides = [1, 1]} : vector<9x256xf32> to vector<1x256xf32>
    %25 = vector.broadcast %24 : vector<1x256xf32> to vector<8x256xf32>
    %26 = arith.mulf %23, %25 : vector<8x256xf32>
    %c240_i32 = arith.constant 240 : i32
    %27 = tpu.dynamic_rotate %2 by %c240_i32 dim 1 : vector<8x256xf32>, i32 -> vector<8x256xf32>
    %28 = vector.extract_strided_slice %0 {offsets = [7, 0], sizes = [1, 256], strides = [1, 1]} : vector<9x256xf32> to vector<1x256xf32>
    %29 = vector.broadcast %28 : vector<1x256xf32> to vector<8x256xf32>
    %30 = arith.mulf %27, %29 : vector<8x256xf32>
    %c239_i32 = arith.constant 239 : i32
    %31 = tpu.dynamic_rotate %2 by %c239_i32 dim 1 : vector<8x256xf32>, i32 -> vector<8x256xf32>
    %32 = vector.extract_strided_slice %0 {offsets = [8, 0], sizes = [1, 256], strides = [1, 1]} : vector<9x256xf32> to vector<1x256xf32>
    %33 = vector.broadcast %32 : vector<1x256xf32> to vector<8x256xf32>
    %34 = arith.mulf %31, %33 : vector<8x256xf32>
    %35 = tpu.concatenate %6, %10, %14, %18, %2, %22, %26, %30, %34 in 0 : vector<8x256xf32>, vector<8x256xf32>, vector<8x256xf32>, vector<8x256xf32>, vector<8x256xf32>, vector<8x256xf32>, vector<8x256xf32>, vector<8x256xf32>, vector<8x256xf32> -> vector<72x256xf32>
    %36 = arith.truncf %35 : vector<72x256xf32> to vector<72x256xbf16>
    %c0_4 = arith.constant 0 : index
    %c0_5 = arith.constant 0 : index
    %37 = vector.load %arg3[%c0_4, %c0_5] : memref<8x72xbf16, #tpu.memory_space<vmem>>, vector<8x72xbf16>
    %cst = arith.constant dense<0.000000e+00> : vector<8x256xf32>
    %38 = tpu.matmul %37, %36, %cst {dimension_numbers = #tpu.dot_dimension_numbers<[1], [0], [0], [1], [0, 0, 1, 1], [], []>} : vector<8x72xbf16>, vector<72x256xbf16>, vector<8x256xf32> -> vector<8x256xf32>
    %c0_6 = arith.constant 0 : index
    %c0_7 = arith.constant 0 : index
    %39 = vector.load %arg5[%c0_6, %c0_7] : memref<8x2xf32, #tpu.memory_space<vmem>>, vector<8x1xf32>
    %40 = vector.broadcast %39 : vector<8x1xf32> to vector<8x256xf32>
    %41 = arith.addf %38, %40 : vector<8x256xf32>
    %cst_8 = arith.constant 0.000000e+00 : f32
    %42 = vector.broadcast %cst_8 : f32 to vector<8x256xf32>
    %43 = arith.maximumf %41, %42 : vector<8x256xf32>
    %c17_i32_9 = arith.constant 17 : i32
    %44 = tpu.dynamic_rotate %43 by %c17_i32_9 dim 1 : vector<8x256xf32>, i32 -> vector<8x256xf32>
    %45 = vector.extract_strided_slice %0 {offsets = [0, 0], sizes = [1, 256], strides = [1, 1]} : vector<9x256xf32> to vector<1x256xf32>
    %46 = vector.broadcast %45 : vector<1x256xf32> to vector<8x256xf32>
    %47 = arith.mulf %44, %46 : vector<8x256xf32>
    %c16_i32_10 = arith.constant 16 : i32
    %48 = tpu.dynamic_rotate %43 by %c16_i32_10 dim 1 : vector<8x256xf32>, i32 -> vector<8x256xf32>
    %49 = vector.extract_strided_slice %0 {offsets = [1, 0], sizes = [1, 256], strides = [1, 1]} : vector<9x256xf32> to vector<1x256xf32>
    %50 = vector.broadcast %49 : vector<1x256xf32> to vector<8x256xf32>
    %51 = arith.mulf %48, %50 : vector<8x256xf32>
    %c15_i32_11 = arith.constant 15 : i32
    %52 = tpu.dynamic_rotate %43 by %c15_i32_11 dim 1 : vector<8x256xf32>, i32 -> vector<8x256xf32>
    %53 = vector.extract_strided_slice %0 {offsets = [2, 0], sizes = [1, 256], strides = [1, 1]} : vector<9x256xf32> to vector<1x256xf32>
    %54 = vector.broadcast %53 : vector<1x256xf32> to vector<8x256xf32>
    %55 = arith.mulf %52, %54 : vector<8x256xf32>
    %c1_i32_12 = arith.constant 1 : i32
    %56 = tpu.dynamic_rotate %43 by %c1_i32_12 dim 1 : vector<8x256xf32>, i32 -> vector<8x256xf32>
    %57 = vector.extract_strided_slice %0 {offsets = [3, 0], sizes = [1, 256], strides = [1, 1]} : vector<9x256xf32> to vector<1x256xf32>
    %58 = vector.broadcast %57 : vector<1x256xf32> to vector<8x256xf32>
    %59 = arith.mulf %56, %58 : vector<8x256xf32>
    %c255_i32_13 = arith.constant 255 : i32
    %60 = tpu.dynamic_rotate %43 by %c255_i32_13 dim 1 : vector<8x256xf32>, i32 -> vector<8x256xf32>
    %61 = vector.extract_strided_slice %0 {offsets = [5, 0], sizes = [1, 256], strides = [1, 1]} : vector<9x256xf32> to vector<1x256xf32>
    %62 = vector.broadcast %61 : vector<1x256xf32> to vector<8x256xf32>
    %63 = arith.mulf %60, %62 : vector<8x256xf32>
    %c241_i32_14 = arith.constant 241 : i32
    %64 = tpu.dynamic_rotate %43 by %c241_i32_14 dim 1 : vector<8x256xf32>, i32 -> vector<8x256xf32>
    %65 = vector.extract_strided_slice %0 {offsets = [6, 0], sizes = [1, 256], strides = [1, 1]} : vector<9x256xf32> to vector<1x256xf32>
    %66 = vector.broadcast %65 : vector<1x256xf32> to vector<8x256xf32>
    %67 = arith.mulf %64, %66 : vector<8x256xf32>
    %c240_i32_15 = arith.constant 240 : i32
    %68 = tpu.dynamic_rotate %43 by %c240_i32_15 dim 1 : vector<8x256xf32>, i32 -> vector<8x256xf32>
    %69 = vector.extract_strided_slice %0 {offsets = [7, 0], sizes = [1, 256], strides = [1, 1]} : vector<9x256xf32> to vector<1x256xf32>
    %70 = vector.broadcast %69 : vector<1x256xf32> to vector<8x256xf32>
    %71 = arith.mulf %68, %70 : vector<8x256xf32>
    %c239_i32_16 = arith.constant 239 : i32
    %72 = tpu.dynamic_rotate %43 by %c239_i32_16 dim 1 : vector<8x256xf32>, i32 -> vector<8x256xf32>
    %73 = vector.extract_strided_slice %0 {offsets = [8, 0], sizes = [1, 256], strides = [1, 1]} : vector<9x256xf32> to vector<1x256xf32>
    %74 = vector.broadcast %73 : vector<1x256xf32> to vector<8x256xf32>
    %75 = arith.mulf %72, %74 : vector<8x256xf32>
    %76 = tpu.concatenate %47, %51, %55, %59, %43, %63, %67, %71, %75 in 0 : vector<8x256xf32>, vector<8x256xf32>, vector<8x256xf32>, vector<8x256xf32>, vector<8x256xf32>, vector<8x256xf32>, vector<8x256xf32>, vector<8x256xf32>, vector<8x256xf32> -> vector<72x256xf32>
    %c0_17 = arith.constant 0 : index
    %c0_18 = arith.constant 0 : index
    %c0_19 = arith.constant 0 : index
    %77 = vector.load %arg2[%c0_17, %c0_18, %c0_19] : memref<1x8x256xf32, #tpu.memory_space<vmem>>, vector<1x8x256xf32>
    %78 = vector.shape_cast %77 : vector<1x8x256xf32> to vector<8x256xf32>
    %79 = tpu.concatenate %76, %78 in 0 : vector<72x256xf32>, vector<8x256xf32> -> vector<80x256xf32>
    %80 = arith.truncf %79 : vector<80x256xf32> to vector<80x256xbf16>
    %c0_20 = arith.constant 0 : index
    %c0_21 = arith.constant 0 : index
    %81 = vector.load %arg4[%c0_20, %c0_21] : memref<8x80xbf16, #tpu.memory_space<vmem>>, vector<8x80xbf16>
    %cst_22 = arith.constant dense<0.000000e+00> : vector<8x256xf32>
    %82 = tpu.matmul %81, %80, %cst_22 {dimension_numbers = #tpu.dot_dimension_numbers<[1], [0], [0], [1], [0, 0, 1, 1], [], []>} : vector<8x80xbf16>, vector<80x256xbf16>, vector<8x256xf32> -> vector<8x256xf32>
    %c0_23 = arith.constant 0 : index
    %c1 = arith.constant 1 : index
    %83 = vector.load %arg5[%c0_23, %c1] : memref<8x2xf32, #tpu.memory_space<vmem>>, vector<8x1xf32>
    %84 = vector.broadcast %83 : vector<8x1xf32> to vector<8x256xf32>
    %85 = arith.addf %82, %84 : vector<8x256xf32>
    %cst_24 = arith.constant 0.000000e+00 : f32
    %86 = vector.broadcast %cst_24 : f32 to vector<8x256xf32>
    %87 = arith.maximumf %85, %86 : vector<8x256xf32>
    %c0_25 = arith.constant 0 : index
    %c0_26 = arith.constant 0 : index
    %c0_27 = arith.constant 0 : index
    %88 = vector.load %arg7[%c0_25, %c0_26, %c0_27] : memref<1x8x256xf32, #tpu.memory_space<vmem>>, vector<1x8x256xf32>
    %89 = vector.shape_cast %88 : vector<1x8x256xf32> to vector<8x256xf32>
    %90 = vector.shape_cast %87 : vector<8x256xf32> to vector<1x8x256xf32>
    tpu.vector_store %arg7[%c0_25, %c0_26, %c0_27], %90 {strides = array<i32>} : memref<1x8x256xf32, #tpu.memory_space<vmem>>, vector<1x8x256xf32>,
    return
  }
  func.func @transform_0(%arg0: i32) -> (i32, i32, i32) {
    %c0_i32 = arith.constant 0 : i32
    %c0_i32_0 = arith.constant 0 : i32
    %c0_i32_1 = arith.constant 0 : i32
    return %arg0, %c0_i32, %c0_i32_0 : i32, i32, i32
  }
  func.func @transform_1(%arg0: i32) -> (i32, i32, i32) {
    %c0_i32 = arith.constant 0 : i32
    %c0_i32_0 = arith.constant 0 : i32
    %c0_i32_1 = arith.constant 0 : i32
    return %arg0, %c0_i32, %c0_i32_0 : i32, i32, i32
  }
  func.func @transform_2(%arg0: i32) -> (i32, i32) {
    %c0_i32 = arith.constant 0 : i32
    %c0_i32_0 = arith.constant 0 : i32
    %c0_i32_1 = arith.constant 0 : i32
    return %c0_i32, %c0_i32_0 : i32, i32
  }
  func.func @transform_3(%arg0: i32) -> (i32, i32) {
    %c0_i32 = arith.constant 0 : i32
    %c0_i32_0 = arith.constant 0 : i32
    %c0_i32_1 = arith.constant 0 : i32
    return %c0_i32, %c0_i32_0 : i32, i32
  }
  func.func @transform_4(%arg0: i32) -> (i32, i32) {
    %c0_i32 = arith.constant 0 : i32
    %c0_i32_0 = arith.constant 0 : i32
    %c0_i32_1 = arith.constant 0 : i32
    return %c0_i32, %c0_i32_0 : i32, i32
  }
  func.func @transform_5(%arg0: i32) -> (i32, i32) {
    %c0_i32 = arith.constant 0 : i32
    %c0_i32_0 = arith.constant 0 : i32
    %c0_i32_1 = arith.constant 0 : i32
    return %c0_i32, %c0_i32_0 : i32, i32
  }
  func.func @transform_6(%arg0: i32) -> (i32, i32, i32) {
    %c0_i32 = arith.constant 0 : i32
    %c0_i32_0 = arith.constant 0 : i32
    %c0_i32_1 = arith.constant 0 : i32
    return %arg0, %c0_i32, %c0_i32_0 : i32, i32, i32
  }
}

</mosaic_0001>

<bundles_post_ra>
// kernel: tpu_custom_call.1
= control target key start
LH: loop header
LB: loop body
LE: loop exit
PB: predicated region body
PF: predicated region fallthrough
CT: control target
= control target key end

     0   :  { %s1584_s0 = inlined_call_operand.hbm [shape: f32[2,8,256], index: 0, kind: input, shape index: {}]   ;;  %s1585_s1 = inlined_call_operand.hbm [shape: f32[2,8,256], index: 1, kind: input, shape index: {}]   ;;  %s1586_s2 = inlined_call_operand.vmem [shape: bf16[8,72], index: 2, kind: input, shape index: {}]   ;;  %s1587_s3 = inlined_call_operand.vmem [shape: bf16[8,80], index: 3, kind: input, shape index: {}]   ;;  %s1588_s4 = inlined_call_operand.vmem [shape: f32[8,2], index: 4, kind: input, shape index: {}]   ;;  %s1589_s5 = inlined_call_operand.hbm [shape: f32[9,256], index: 5, kind: input, shape index: {}]   ;;  %s1590_s6 = inlined_call_operand.hbm [shape: f32[2,8,256], index: 6, kind: output, shape index: {}]  }
   0x1   :  { %1596 = sst [smem:[#allocation15_spill]] %s1589_s5 }
   0x2   :  { %11 = vsyncpa [#allocation3], 0 }
   0x3   :  { %13 = vsyncpa [#allocation3 + $0x1], 0 }
   0x4   :  { %14 = vsyncpa [#allocation6], 0 }
   0x5   :  { %16 = vsyncpa [#allocation6 + $0x1], 0 }
   0x6   :  { %17 = vsyncpa [#allocation4], 0 }
   0x7   :  { %19 = vsyncpa [#allocation4 + $0x1], 0  ;;  %s1102_s21 = smov 0   ;;  %s1104_s22 = smov 0  }
   0x8   :  { %s1106_s23 = smov 0   ;;  %s1108_s24 = smov 0  }
   0x9 LB: > { %1597 = sst [smem:[#allocation13_spill]] %s1045_s23  ;;  %s1123_s25 = sadd.s32 4294967295, %s1049_s24   ;;  %s1049_s24 = sphi %s1108_s24, %s1618_s24   ;;  %s1045_s23 = sphi %s1106_s23, %s1615_s23   ;;  %s1041_s22 = sphi %s1104_s22, %s1617_s22   ;;  %s1037_s21 = sphi %s1102_s21, %s1616_s21  }
   0xa   : > { %s783_s26 = sadd.s32 4294967294, %s1049_s24   ;;  %p45_p0 = scmp.ne.s32.totalorder %s1041_s22, %s1037_s21 }
   0xb   : > { %p1591_p1 = scmp.eq.s32.totalorder %s1123_s25, 0  ;;  %p185_p3 = scmp.eq.s32.totalorder %s783_s26, 1 }
   0xc   : > { %p784_p5 = scmp.ge.s32.totalorder %s1049_s24, 1  ;;  %p192_p7 = scmp.lt.s32.totalorder %s1049_s24, 3 }
   0xd   : > { %p1132_p4 = por %p1591_p1, %p45_p0  ;;  %p1137_p6 = por %p185_p3, %p45_p0 }
   0xe   : > { %p1142_p8 = pnand %p784_p5, %p192_p7  ;;  %s1051_s30 = smov [#allocation7]  }
   0xf   : > { %s1598_s27 = scalar_select %p1132_p4, 1, 0 }
  0x10   : > { %s1599_s28 = scalar_select %p1137_p6, 1, 0 }
  0x11   : > { %s1600_s29 = scalar_select %p1142_p8, 1, 0 }
  0x12   : > { %s213_s7 = sshll.u32 %s1051_s30, 4  ;;  %p821_p9 = pneg %p1142_p8  ;;  %s1146_s7 = int_to_ptr.vmem [resolvable:$true] %s213_s7 }
  0x13   : > { %s1158_s9 = sadd.s32 1, %s1049_s24   ;;  %s32_s10 = sadd.s32 1, %s1045_s23 }
  0x14   : > { %p1153_p11 = pnand %p821_p9, %p1591_p1  ;;  %s29_s11 = ssub.s32 %s1049_s24, %s1158_s9 }
  0x15   : > { %s1602_s5 = sld [smem:[#allocation15_spill]] }
  0x16   : > { %p889_p13 = pneg %p1153_p11 }
  0x1b   : > { %s887_s14 = scalar_lea.hbm %s1602_s5, 512 }
  0x1c   : > { %p888_p12 = scmp.ne.s32.totalorder %s1602_s5, %s887_s14  ;;  %p894_p5 = scmp.lt.u32.totalorder %s887_s14, %s1602_s5 }
  0x1e   : > { %p890_p0 = pnand %p889_p13, %p888_p12 }
  0x20   : > { %p891_p3 = pneg %p890_p0 }
  0x22   : > { %p896_p7 = pnand %p894_p5, %p891_p3 }
  0x24   : > { %899 = shalt.err (!%p896_p7)
}
  0x25   : > { %s900_s19 = scalar_lea.vmem %s1146_s7, 512  ;;  %p908_p2 = scmp.lt.s32.totalorder %s1146_s7, %s1146_s7 }
  0x26   : > { %p901_p9 = scmp.ne.s32.totalorder %s1146_s7, %s900_s19  ;;  %p909_p6 = scmp.lt.s32.totalorder %s900_s19, %s900_s19 }
  0x28   : > { %p903_p10 = pnand %p901_p9, %p889_p13  ;;  %p910_p4 = por %p909_p6, %p908_p2 }
  0x2a   : > { %p904_p1 = pneg %p903_p10 }
  0x2c   : > { %p911_p8 = pnand %p910_p4, %p904_p1 }
  0x2e   : > { %914 = shalt.err (!%p911_p8)
}
  0x2f   : > { %s1052_s20 = smov 256   ;;  %s1053_s26 = smov 16  }
  0x30   : > { %824 = dma.hbm_to_vmem [thread:$0]  (!%p1153_p11), %s1602_s5, 512, %s1146_s7, [#allocation6], %s1052_s20, %s1052_s20, %s1053_s26  }
  0x31   : > { %p30_p2 = scmp.eq.s32.totalorder %s29_s11, 0  ;;  %p39_p1 = scmp.ne.s32.totalorder %s1045_s23, %s1041_s22 }
  0x32   : > { %p40_p4 = scmp.eq.s32.totalorder %s1049_s24, 0  ;;  %p837_p6 = scmp.lt.s32.totalorder %s1049_s24, 2 }
  0x33   : > { %s1189_s13 = scalar_select %p30_p2, %s1045_s23, %s32_s10  }
  0x34   : > { %p41_p8 = por %p40_p4, %p39_p1  ;;  %p1604_p10 = scmp.eq.s32.totalorder %s1123_s25, 1 }
  0x35   : > { %1603 = sst [smem:[#allocation14_spill]] %s1189_s13  ;;  %s227_s15 = sand.u32 1, %s1045_s23  }
  0x36   : > { %p1193_p12 = por %p1604_p10, %p39_p1  ;;  %s808_s16 = sshll.u32 %s1049_s24, 8 }
  0x37   : > { %s1199_s17 = sshll.u32 %s227_s15, 4  ;;  %s1204_s7 = scalar_lea.hbm %s1584_s0, %s808_s16 }
  0x38   : > { %s1605_s14 = scalar_select %p1193_p12, 1, 0 }
  0x39   : > { %s231_s10 = scalar_lea.vmem [#allocation2], %s1199_s17  ;;  %p1207_p11 = pnand %p837_p6, %p41_p8 }
  0x3a   : > { %s239_s11 = sshll.u32 %s231_s10, 4  ;;  %s1216_s30 = scalar_lea.hbm %s1585_s1, %s808_s16  ;;  %s1211_s11 = int_to_ptr.vmem [resolvable:$true] %s239_s11 }
  0x3b   : > { %s228_s12 = scalar_lea.sflag [#allocation3], %s227_s15  ;;  %s915_s8 = scalar_lea.hbm %s1204_s7, 256 }
  0x3c   : > { %p916_p13 = scmp.ne.s32.totalorder %s1204_s7, %s915_s8  ;;  %p917_p0 = pneg %p1207_p11 }
  0x3d   : > { %s920_s5 = scalar_lea.hbm %s1584_s0, 512  ;;  %p921_p7 = scmp.lt.u32.totalorder %s1204_s7, %s1584_s0 }
  0x3e   : > { %p918_p3 = pnand %p917_p0, %p916_p13  ;;  %p922_p9 = scmp.lt.u32.totalorder %s920_s5, %s915_s8 }
  0x3f   : > { %p924_p1 = scmp.lt.u32.totalorder %s915_s8, %s1204_s7 }
  0x40   : > { %p919_p5 = pneg %p918_p3  ;;  %p923_p2 = por %p922_p9, %p921_p7 }
  0x42   : > { %p925_p4 = por %p924_p1, %p923_p2 }
  0x44   : > { %p926_p6 = pnand %p925_p4, %p919_p5 }
  0x46   : > { %929 = shalt.err (!%p926_p6)
}
  0x47   : > { %s930_s15 = scalar_lea.vmem %s1211_s11, 256  ;;  %s1054_s16 = smov [#allocation2]  }
  0x48   : > { %p931_p8 = scmp.ne.s32.totalorder %s1211_s11, %s930_s15  ;;  %s935_s20 = sshll.u32 %s1054_s16, 4  ;;  %s936_s20 = int_to_ptr.vmem [resolvable:$false] %s935_s20 }
  0x49   : > { %s937_s23 = scalar_lea.vmem %s936_s20, 512  ;;  %p938_p3 = scmp.lt.s32.totalorder %s1211_s11, %s936_s20 }
  0x4a   : > { %p933_p10 = pnand %p931_p8, %p917_p0  ;;  %p939_p7 = scmp.lt.s32.totalorder %s937_s23, %s930_s15 }
  0x4c   : > { %p934_p13 = pneg %p933_p10  ;;  %p940_p9 = por %p939_p7, %p938_p3 }
  0x4e   : > { %p941_p2 = pnand %p940_p9, %p934_p13 }
  0x50   : > { %944 = shalt.err (!%p941_p2)
}
  0x51   : > { %828 = dma.hbm_to_vmem [thread:$0]  (!%p1207_p11), %s1204_s7, 256, %s1211_s11, %s228_s12  }
  0x52   : > { %s246_s5 = sand.u32 1, %s1049_s24   ;;  %s250_s13 = scalar_lea.vmem [#allocation5], %s1199_s17 }
  0x53   : > { %s258_s26 = sshll.u32 %s250_s13, 4  ;;  %s247_s8 = scalar_lea.sflag [#allocation6], %s246_s5  ;;  %s259_s26 = int_to_ptr.vmem [resolvable:$true] %s258_s26 }
  0x54   : > { %s945_s18 = scalar_lea.hbm %s1216_s30, 256  ;;  %s950_s16 = scalar_lea.hbm %s1585_s1, 512 }
  0x55   : > { %p946_p5 = scmp.ne.s32.totalorder %s1216_s30, %s945_s18  ;;  %p951_p6 = scmp.lt.u32.totalorder %s1216_s30, %s1585_s1 }
  0x56   : > { %p952_p8 = scmp.lt.u32.totalorder %s950_s16, %s945_s18  ;;  %p954_p13 = scmp.lt.u32.totalorder %s945_s18, %s1216_s30 }
  0x57   : > { %p948_p1 = pnand %p946_p5, %p917_p0 }
  0x58   : > { %p953_p10 = por %p952_p8, %p951_p6 }
  0x59   : > { %p949_p4 = pneg %p948_p1 }
  0x5a   : > { %p955_p3 = por %p954_p13, %p953_p10 }
  0x5c   : > { %p956_p7 = pnand %p955_p3, %p949_p4 }
  0x5e   : > { %959 = shalt.err (!%p956_p7)
}
  0x5f   : > { %s960_s17 = scalar_lea.vmem %s259_s26, 256  ;;  %s1055_s7 = smov [#allocation5]  }
  0x60   : > { %p961_p9 = scmp.ne.s32.totalorder %s259_s26, %s960_s17  ;;  %s965_s11 = sshll.u32 %s1055_s7, 4  ;;  %s966_s11 = int_to_ptr.vmem [resolvable:$false] %s965_s11 }
  0x61   : > { %s967_s12 = scalar_lea.vmem %s966_s11, 512  ;;  %p968_p1 = scmp.lt.s32.totalorder %s259_s26, %s966_s11 }
  0x62   : > { %p963_p2 = pnand %p961_p9, %p917_p0  ;;  %p969_p12 = scmp.lt.s32.totalorder %s967_s12, %s960_s17 }
  0x64   : > { %p964_p5 = pneg %p963_p2  ;;  %p970_p6 = por %p969_p12, %p968_p1 }
  0x66   : > { %p971_p8 = pnand %p970_p6, %p964_p5 }
  0x68   : > { %974 = shalt.err (!%p971_p8)
}
  0x69   : > { %831 = dma.hbm_to_vmem [thread:$0]  (!%p1207_p11), %s1216_s30, 256, %s259_s26, %s247_s8  }
  0x6a   : > { %p1607_p4 = scmp.ne.s32.totalorder %s1600_s29, 0 }
  0x6b   : > { %s1267_s5 = sand.u32 (!%p1607_p4), 1, %s1041_s22   ;;  %p1608_p12 = scmp.ne.s32.totalorder (!%p1607_p4), %s1598_s27, 0 }
  0x6c   : > { %267 = sbr.rel (%p1607_p4) target bundleno = 878 (0x36e), region = 44  ;;  %s1270_s13 = sshll.u32 (!%p1607_p4), %s1267_s5, 4 }
  0x6d   : > { %s270_s18 = scalar_lea.sflag (!%p1607_p4), [#allocation3], %s1267_s5  ;;  %s273_s10 = scalar_lea.vmem (!%p1607_p4), [#allocation2], %s1270_s13 }
  0x73   : > { %1020 = dma.done.wait (%p1608_p12), %s270_s18, 256  }
  0x74   : > { %1022 = vsyncadd (%p1608_p12), %s270_s18, 4294967040  ;;  %s278_s29 = sand.u32 1, %s1123_s25   ;;  %s282_s30 = scalar_lea.vmem [#allocation5], %s1270_s13 }
  0x75   : > { %s279_s19 = scalar_lea.sflag [#allocation6], %s278_s29 }
  0x76   : > { %1024 = dma.done.wait (%p1608_p12), %s279_s19, 256  }
  0x77   : > { %1026 = vsyncadd (%p1608_p12), %s279_s19, 4294967040  ;;  %p1609_p11 = scmp.eq.s32.totalorder %s1123_s25, 0 }
  0x79   : > { %1028 = dma.done.wait (%p1609_p11), [#allocation6], 512   ;;  %p1610_p0 = pmov %p1609_p11 }
  0x7a   : > { %v1288_v0 = vld [vmem:[%s273_s10] sm:$0xff]  ;;  %s1056_s26 = smov 16   ;;  %s1057_s8 = smov 17   ;;  %v1294_v1 = vld [vmem:[%s273_s10 + $0x8] sm:$0xff]  ;;  %v1062_v2 = vmov 0   ;;  %v331_v4 = vlaneseq  ;;  %vm486_vm8 = vcmask 1043456  }
  0x7b   : > { %1030 = vsyncadd (%p1610_p0), [#allocation6], 4294966784  ;;  %346 = vrot.lane.b32.xlu1 %v1288_v0, %s1056_s26  ;;  %327 = vrot.lane.b32.xlu0 %v1288_v0, %s1057_s8  ;;  %s1058_s27 = smov 15   ;;  %s1059_s15 = smov 1   ;;  %v1327_v3 = vld [vmem:[%s1588_s4] sm:$0xff]  ;;  %v1338_v10 = vld [vmem:[#allocation7 + $0x8] sm:$0xff] }
  0x7c   : > { %s1060_s16 = smov 127   ;;  %s1061_s20 = smov 113   ;;  %525 = vmatprep.mubr.bf16.mxu0 %v1062_v2  ;;  %885 = vset.pattern.permute.xlu0 %v1062_v2  ;;  %v1330_v5 = vshrl.u32 %v331_v4, 7  ;;  %v1332_v6 = vand.u32 127, %v331_v4  ;;  %v1336_v9 = vld [vmem:[#allocation7] sm:$0xff]  ;;  %vm482_vm9 = vcmask 588800  }
  0x7d   : > { %653 = vmatprep.mubr.bf16.mxu1 %v1062_v2  ;;  %s1063_s23 = smov 112   ;;  %s1064_s17 = smov 111   ;;  %vm617_vm10 = vcmask 654336  }
  0x7e   : > { %v355_v7 = vsub.s32 1, %v1330_v5  ;;  %v338_v8 = vsub.s32 0, %v1330_v5  ;;  %vm350_vm0 = vcmp.lt.s32.totalorder %v1332_v6, 16  ;;  %vm333_vm1 = vcmp.lt.s32.totalorder %v1332_v6, 17  ;;  %s810_s19 = sshll.u32 %s1123_s25, 8  ;;  %s667_s25 = scalar_lea.sflag [#allocation4], %s1267_s5 }
  0x7f   : > { %348 = vrot.lane.b32.xlu1 %v1294_v1, %s1056_s26  ;;  %329 = vrot.lane.b32.xlu0 %v1294_v1, %s1057_s8  ;;  %v372_v19 = vsub.s32 2, %v1330_v5  ;;  %v389_v20 = vsub.s32 3, %v1330_v5  ;;  %vm367_vm2 = vcmp.lt.s32.totalorder %v1332_v6, 15  ;;  %vm384_vm3 = vcmp.lt.s32.totalorder %v1332_v6, 1  ;;  %p1611_p13 = scmp.ne.s32.totalorder %s1605_s14, 0 }
  0x80   : > { %v1343_v13 = vrot.slane %v1336_v9, %v355_v7  ;;  %v1346_v14 = vrot.slane %v1336_v9, %v338_v8  ;;  %v1349_v15 = vrot.slane %v1338_v10, %v338_v8  ;;  %v1352_v16 = vrot.slane %v1338_v10, %v355_v7 }
  0x81   : > { %v406_v33 = vsub.s32 5, %v1330_v5  ;;  %v1372_v34 = vrot.slane %v1336_v9, %v372_v19  ;;  %v1375_v35 = vrot.slane %v1338_v10, %v372_v19  ;;  %v1378_v36 = vrot.slane %v1336_v9, %v389_v20 }
  0x82   : > { %v1381_v37 = vrot.slane %v1338_v10, %v389_v20  ;;  %vm401_vm4 = vcmp.lt.s32.totalorder %v1332_v6, 127  ;;  %v423_v56 = vsub.s32 6, %v1330_v5  ;;  %v440_v59 = vsub.s32 7, %v1330_v5  ;;  %v1439_v20 = vld [vmem:[#allocation7 + $0x10] ss:$0 sm:$0xff] }
  0x83   : > { %365 = vrot.lane.b32.xlu1 %v1294_v1, %s1058_s27  ;;  %363 = vrot.lane.b32.xlu0 %v1288_v0, %s1058_s27  ;;  %v1393_v44 = vrot.slane %v1336_v9, %v406_v33  ;;  %v1396_v45 = vrot.slane %v1338_v10, %v406_v33  ;;  %vm418_vm5 = vcmp.lt.s32.totalorder %v1332_v6, 113  ;;  %vm435_vm6 = vcmp.lt.s32.totalorder %v1332_v6, 112  ;;  %v475_v33 = vld [vmem:[%s1586_s2] sm:$0xf] }
  0x84   : > { %v1414_v2 = vrot.slane %v1336_v9, %v423_v56  ;;  %v1417_v4 = vrot.slane %v1338_v10, %v423_v56  ;;  %v1421_v5 = vrot.slane %v1336_v9, %v440_v59  ;;  %v1424_v7 = vrot.slane %v1338_v10, %v440_v59 }
  0x85   : > { %vm452_vm7 = vcmp.lt.s32.totalorder %v1332_v6, 111  ;;  %v612_v6 = vld [vmem:[%s1587_s3] sm:$0xf] }
  0x87   : > { %382 = vrot.lane.b32.xlu1 %v1294_v1, %s1059_s15  ;;  %380 = vrot.lane.b32.xlu0 %v1288_v0, %s1059_s15 }
  0x8b   : > { %399 = vrot.lane.b32.xlu1 %v1294_v1, %s1060_s16  ;;  %397 = vrot.lane.b32.xlu0 %v1288_v0, %s1060_s16 }
  0x8f   : > { %416 = vrot.lane.b32.xlu1 %v1294_v1, %s1061_s20  ;;  %414 = vrot.lane.b32.xlu0 %v1288_v0, %s1061_s20 }
  0x93   : > { %433 = vrot.lane.b32.xlu1 %v1294_v1, %s1063_s23  ;;  %431 = vrot.lane.b32.xlu0 %v1288_v0, %s1063_s23 }
  0x97   : > { %450 = vrot.lane.b32.xlu1 %v1294_v1, %s1064_s17  ;;  %448 = vrot.lane.b32.xlu0 %v1288_v0, %s1064_s17 }
  0x9b   : > { %479 = vperm.xlu0 %885, %v1327_v3  }
  0xed   : > { %v347_v11 = vpop.permute.xlu1 %346  ;;  %v328_v12 = vpop.permute.xlu0 %327 }
  0xf1   : > { %v349_v17 = vpop.permute.xlu1 %348  ;;  %v330_v18 = vpop.permute.xlu0 %329 }
  0xf2   : > { %v351_v21 = vsel %vm350_vm0, %v347_v11, %v349_v17  ;;  %v352_v22 = vsel %vm350_vm0, %v349_v17, %v347_v11  ;;  %v334_v23 = vsel %vm333_vm1, %v328_v12, %v330_v18  ;;  %v335_v24 = vsel %vm333_vm1, %v330_v18, %v328_v12 }
  0xf3   : > { %v361_v25 = vmul.f32 %v1343_v13, %v352_v22  ;;  %v344_v26 = vmul.f32 %v1346_v14, %v335_v24  ;;  %v345_v27 = vmul.f32 %v1349_v15, %v334_v23  ;;  %v362_v28 = vmul.f32 %v1352_v16, %v351_v21  ;;  %v1441_v21 = vld [vmem:[#allocation7 + $0x18] ss:$0 sm:$0xff] }
  0xf5   : > { %v366_v29 = vpop.permute.xlu1 %365  ;;  %v364_v30 = vpop.permute.xlu0 %363  ;;  %v466_v31 = vpack.c.bf16 %v362_v28, %v345_v27  ;;  %v465_v32 = vpack.c.bf16 %v361_v25, %v344_v26 }
  0xf6   : > { %v368_v38 = vsel %vm367_vm2, %v364_v30, %v366_v29  ;;  %v369_v39 = vsel %vm367_vm2, %v366_v29, %v364_v30 }
  0xf7   : > { %493 = vmatprep.subr.bf16.mxu0 %v466_v31  ;;  %v378_v46 = vmul.f32 %v1372_v34, %v369_v39  ;;  %v379_v47 = vmul.f32 %v1375_v35, %v368_v38 }
  0xf8   : > { %494 = vmatpush1.bf16.msra.mxu0 %v465_v32 }
  0xf9   : > { %v383_v40 = vpop.permute.xlu1 %382  ;;  %v381_v41 = vpop.permute.xlu0 %380 }
  0xfa   : > { %v385_v42 = vsel %vm384_vm3, %v381_v41, %v383_v40  ;;  %v386_v43 = vsel %vm384_vm3, %v383_v40, %v381_v41 }
  0xfb   : > { %v395_v48 = vmul.f32 %v1378_v36, %v386_v43  ;;  %v396_v49 = vmul.f32 %v1381_v37, %v385_v42 }
  0xfd   : > { %v400_v50 = vpop.permute.xlu1 %399  ;;  %v398_v51 = vpop.permute.xlu0 %397  ;;  %v468_v52 = vpack.c.bf16 %v396_v49, %v379_v47  ;;  %v467_v53 = vpack.c.bf16 %v395_v48, %v378_v46  ;;  %v1065_v49 = vmov 1  }
  0xfe   : > { %v402_v54 = vsel %vm401_vm4, %v398_v51, %v400_v50  ;;  %v403_v55 = vsel %vm401_vm4, %v400_v50, %v398_v51  ;;  %886 = vset.pattern.permute.xlu0 %v1065_v49 }
  0xff   : > { %v412_v57 = vmul.f32 %v1393_v44, %v402_v54  ;;  %v413_v58 = vmul.f32 %v1396_v45, %v403_v55  ;;  %495 = vmatprep.subr.bf16.mxu0 %v468_v52 }
 0x100   : > { %496 = vmatpush1.bf16.msra.mxu0 %v467_v53 }
 0x101   : > { %v417_v60 = vpop.permute.xlu1 %416  ;;  %v415_v61 = vpop.permute.xlu0 %414  ;;  %v470_v62 = vpack.c.bf16 %v413_v58, %v1294_v1  ;;  %v469_v63 = vpack.c.bf16 %v412_v57, %v1288_v0 }
 0x102   : > { %v419_v1 = vsel %vm418_vm5, %v415_v61, %v417_v60  ;;  %v420_v0 = vsel %vm418_vm5, %v417_v60, %v415_v61 }
 0x103   : > { %497 = vmatprep.subr.bf16.mxu0 %v470_v62  ;;  %v429_v9 = vmul.f32 %v1414_v2, %v419_v1  ;;  %v430_v10 = vmul.f32 %v1417_v4, %v420_v0 }
 0x104   : > { %498 = vmatpush1.bf16.msra.mxu0 %v469_v63 }
 0x105   : > { %v434_v8 = vpop.permute.xlu1 %433  ;;  %v432_v11 = vpop.permute.xlu0 %431 }
 0x106   : > { %v436_v12 = vsel %vm435_vm6, %v432_v11, %v434_v8  ;;  %v437_v17 = vsel %vm435_vm6, %v434_v8, %v432_v11 }
 0x107   : > { %v446_v18 = vmul.f32 %v1421_v5, %v436_v12  ;;  %v447_v19 = vmul.f32 %v1424_v7, %v437_v17 }
 0x109   : > { %v451_v22 = vpop.permute.xlu1 %450  ;;  %v449_v23 = vpop.permute.xlu0 %448  ;;  %v472_v24 = vpack.c.bf16 %v447_v19, %v430_v10  ;;  %v471_v25 = vpack.c.bf16 %v446_v18, %v429_v9 }
 0x10a   : > { %v453_v26 = vsel %vm452_vm7, %v449_v23, %v451_v22  ;;  %v454_v27 = vsel %vm452_vm7, %v451_v22, %v449_v23 }
 0x10b   : > { %v463_v28 = vmul.f32 %v1439_v20, %v453_v26  ;;  %v464_v29 = vmul.f32 %v1441_v21, %v454_v27  ;;  %499 = vmatprep.subr.bf16.mxu0 %v472_v24 }
 0x10c   : > { %500 = vmatpush1.bf16.msra.mxu0 %v471_v25 }
 0x10d   : > { %v473_v30 = vpack.c.bf16 %v463_v28, %v463_v28  ;;  %v474_v31 = vpack.c.bf16 %v464_v29, %v464_v29 }
 0x10f   : > { %800 = vmatprep.subr.msk.bf16.mxu0 %vm486_vm8, %v474_v31  ;;  %v488_v32 = vsel %vm486_vm8, %v473_v30, 0 }
 0x110   : > { %502 = vmatpush1.bf16.msra.mxu0 %v488_v32 }
 0x113   : > { %801 = vmatmul.mubr.msk.bf16.vlgmr.msra.gmra.mrb[0].mxu0 %vm482_vm9, %v475_v33 }
 0x11a   : > { %v480_v38 = vpop.permute.xlu0 %479 }
 0x1e6   : > { %v527_v39 = vpop.f32.mrb[0].mxu0 }
 0x1e7   : > { %v528_v40 = vadd.f32 %v527_v39, %v480_v38  ;;  %v529_v41 = vpop.f32.mrb[1].mxu0 }
 0x1e8   : > { %v531_v42 = vpop.f32.mrb[2].mxu0  ;;  %v530_v46 = vadd.f32 %v529_v41, %v480_v38 }
 0x1e9   : > { %v1452_v43 = vmax.f32 %v528_v40, 0.0  ;;  %v532_v47 = vpop.f32.mrb[3].mxu0 }
 0x1ea   : > { %v535_v48 = vmax.f32 %v530_v46, 0.0  ;;  %v601_v47 = vld [vmem:[%s282_s30 + $0x8] sm:$0xff] }
 0x1eb   : > { %544 = vrot.lane.b32.xlu0 %v1452_v43, %s1056_s26  ;;  %536 = vrot.lane.b32.xlu1 %v1452_v43, %s1057_s8 }
 0x1ef   : > { %552 = vrot.lane.b32.xlu0 %v1452_v43, %s1058_s27  ;;  %538 = vrot.lane.b32.xlu1 %v535_v48, %s1057_s8 }
 0x1f3   : > { %560 = vrot.lane.b32.xlu0 %v1452_v43, %s1059_s15  ;;  %546 = vrot.lane.b32.xlu1 %v535_v48, %s1056_s26 }
 0x1f7   : > { %568 = vrot.lane.b32.xlu0 %v1452_v43, %s1060_s16  ;;  %554 = vrot.lane.b32.xlu1 %v535_v48, %s1058_s27 }
 0x1fb   : > { %576 = vrot.lane.b32.xlu0 %v1452_v43, %s1061_s20  ;;  %562 = vrot.lane.b32.xlu1 %v535_v48, %s1059_s15  ;;  %s1540_s15 = scalar_lea.hbm %s1590_s6, %s810_s19 }
 0x1ff   : > { %584 = vrot.lane.b32.xlu0 %v1452_v43, %s1063_s23  ;;  %570 = vrot.lane.b32.xlu1 %v535_v48, %s1060_s16  ;;  %s1066_s16 = smov [#allocation8]  }
 0x203   : > { %592 = vrot.lane.b32.xlu0 %v1452_v43, %s1064_s17  ;;  %578 = vrot.lane.b32.xlu1 %v535_v48, %s1061_s20  ;;  %s979_s20 = sshll.u32 %s1066_s16, 4  ;;  %s980_s20 = int_to_ptr.vmem [resolvable:$false] %s979_s20 }
 0x207   : > { %586 = vrot.lane.b32.xlu1 %v535_v48, %s1063_s23  ;;  %614 = vperm.xlu0 %886, %v1327_v3   ;;  %s981_s23 = scalar_lea.vmem %s980_s20, 512 }
 0x20b   : > { %594 = vrot.lane.b32.xlu1 %v535_v48, %s1064_s17 }
 0x25d   : > { %v545_v50 = vpop.permute.xlu0 %544  ;;  %v537_v51 = vpop.permute.xlu1 %536 }
 0x261   : > { %v553_v52 = vpop.permute.xlu0 %552  ;;  %v539_v53 = vpop.permute.xlu1 %538 }
 0x262   : > { %v540_v54 = vsel %vm333_vm1, %v537_v51, %v539_v53  ;;  %v541_v55 = vsel %vm333_vm1, %v539_v53, %v537_v51 }
 0x263   : > { %v542_v59 = vmul.f32 %v541_v55, %v1346_v14  ;;  %v543_v61 = vmul.f32 %v540_v54, %v1349_v15 }
 0x265   : > { %v561_v56 = vpop.permute.xlu0 %560  ;;  %v547_v57 = vpop.permute.xlu1 %546 }
 0x266   : > { %v548_v58 = vsel %vm350_vm0, %v545_v50, %v547_v57  ;;  %v549_v3 = vsel %vm350_vm0, %v547_v57, %v545_v50 }
 0x267   : > { %v550_v60 = vmul.f32 %v549_v3, %v1343_v13  ;;  %v551_v62 = vmul.f32 %v548_v58, %v1352_v16 }
 0x269   : > { %v555_v63 = vpop.permute.xlu1 %554  ;;  %v603_v1 = vpack.c.bf16 %v551_v62, %v543_v61  ;;  %v602_v0 = vpack.c.bf16 %v550_v60, %v542_v59  ;;  %v569_v8 = vpop.permute.xlu0 %568 }
 0x26a   : > { %v556_v11 = vsel %vm367_vm2, %v553_v52, %v555_v63  ;;  %v557_v12 = vsel %vm367_vm2, %v555_v63, %v553_v52 }
 0x26b   : > { %621 = vmatprep.subr.bf16.mxu1 %v603_v1  ;;  %v558_v15 = vmul.f32 %v557_v12, %v1372_v34  ;;  %v559_v16 = vmul.f32 %v556_v11, %v1375_v35 }
 0x26c   : > { %622 = vmatpush1.bf16.msra.mxu1 %v602_v0 }
 0x26d   : > { %v563_v17 = vpop.permute.xlu1 %562  ;;  %v577_v18 = vpop.permute.xlu0 %576 }
 0x26e   : > { %v564_v13 = vsel %vm384_vm3, %v561_v56, %v563_v17  ;;  %v565_v14 = vsel %vm384_vm3, %v563_v17, %v561_v56 }
 0x26f   : > { %v566_v9 = vmul.f32 %v565_v14, %v1378_v36  ;;  %v567_v10 = vmul.f32 %v564_v13, %v1381_v37 }
 0x271   : > { %v571_v19 = vpop.permute.xlu1 %570  ;;  %v605_v22 = vpack.c.bf16 %v567_v10, %v559_v16  ;;  %v604_v23 = vpack.c.bf16 %v566_v9, %v558_v15  ;;  %v585_v27 = vpop.permute.xlu0 %584 }
 0x272   : > { %v572_v24 = vsel %vm401_vm4, %v569_v8, %v571_v19  ;;  %v573_v25 = vsel %vm401_vm4, %v571_v19, %v569_v8 }
 0x273   : > { %v574_v26 = vmul.f32 %v572_v24, %v1393_v44  ;;  %v575_v34 = vmul.f32 %v573_v25, %v1396_v45  ;;  %623 = vmatprep.subr.bf16.mxu1 %v605_v22 }
 0x274   : > { %624 = vmatpush1.bf16.msra.mxu1 %v604_v23 }
 0x275   : > { %v579_v35 = vpop.permute.xlu1 %578  ;;  %v607_v36 = vpack.c.bf16 %v575_v34, %v535_v48  ;;  %v606_v37 = vpack.c.bf16 %v574_v26, %v1452_v43  ;;  %v593_v39 = vpop.permute.xlu0 %592 }
 0x276   : > { %v580_v28 = vsel %vm418_vm5, %v577_v18, %v579_v35  ;;  %v581_v29 = vsel %vm418_vm5, %v579_v35, %v577_v18 }
 0x277   : > { %625 = vmatprep.subr.bf16.mxu1 %v607_v36  ;;  %v582_v31 = vmul.f32 %v580_v28, %v1414_v2  ;;  %v583_v32 = vmul.f32 %v581_v29, %v1417_v4  ;;  %v600_v2 = vld [vmem:[%s282_s30] sm:$0xff]  ;;  %s319_s30 = scalar_lea.vmem [#allocation8], %s1270_s13 }
 0x278   : > { %626 = vmatpush1.bf16.msra.mxu1 %v606_v37  ;;  %s681_s26 = sshll.u32 %s319_s30, 4  ;;  %s1542_s26 = int_to_ptr.vmem [resolvable:$true] %s681_s26 }
 0x279   : > { %v587_v44 = vpop.permute.xlu1 %586  ;;  %s975_s13 = scalar_lea.vmem %s1542_s26, 256  ;;  %p982_p9 = scmp.lt.s32.totalorder %s1542_s26, %s980_s20 }
 0x27a   : > { %v588_v45 = vsel %vm435_vm6, %v585_v27, %v587_v44  ;;  %v589_v30 = vsel %vm435_vm6, %v587_v44, %v585_v27  ;;  %p976_p10 = scmp.ne.s32.totalorder %s1542_s26, %s975_s13  ;;  %p983_p2 = scmp.lt.s32.totalorder %s981_s23, %s975_s13 }
 0x27b   : > { %v590_v33 = vmul.f32 %v588_v45, %v1421_v5  ;;  %v591_v38 = vmul.f32 %v589_v30, %v1424_v7 }
 0x27c   : > { %p977_p3 = pnand %p976_p10, %p1611_p13  ;;  %p984_p5 = por %p983_p2, %p982_p9 }
 0x27d   : > { %v595_v40 = vpop.permute.xlu1 %594  ;;  %v609_v41 = vpack.c.bf16 %v591_v38, %v583_v32  ;;  %v608_v42 = vpack.c.bf16 %v590_v33, %v582_v31 }
 0x27e   : > { %v596_v43 = vsel %vm452_vm7, %v593_v39, %v595_v40  ;;  %v597_v46 = vsel %vm452_vm7, %v595_v40, %v593_v39  ;;  %p978_p7 = pneg %p977_p3 }
 0x27f   : > { %v598_v4 = vmul.f32 %v1439_v20, %v596_v43  ;;  %v599_v5 = vmul.f32 %v1441_v21, %v597_v46  ;;  %627 = vmatprep.subr.bf16.mxu1 %v609_v41 }
 0x280   : > { %628 = vmatpush1.bf16.msra.mxu1 %v608_v42  ;;  %p985_p1 = pnand %p984_p5, %p978_p7 }
 0x281   : > { %v611_v7 = vpack.c.bf16 %v601_v47, %v599_v5  ;;  %v610_v48 = vpack.c.bf16 %v600_v2, %v598_v4 }
 0x283   : > { %629 = vmatprep.subr.bf16.mxu1 %v611_v7 }
 0x284   : > { %630 = vmatpush1.bf16.msra.mxu1 %v610_v48 }
 0x286   : > { %v615_v49 = vpop.permute.xlu0 %614 }
 0x287   : > { %802 = vmatmul.mubr.msk.bf16.vlgmr.msra.gmra.mrb[0].mxu1 %vm617_vm10, %v612_v6 }
 0x35a   : > { %v655_v50 = vpop.f32.mrb[0].mxu1 }
 0x35b   : > { %v656_v51 = vadd.f32 %v655_v50, %v615_v49  ;;  %v657_v20 = vpop.f32.mrb[1].mxu1 }
 0x35c   : > { %v658_v21 = vadd.f32 %v657_v20, %v615_v49  ;;  %v659_v52 = vpop.f32.mrb[2].mxu1 }
 0x35d   : > { %v662_v53 = vmax.f32 %v656_v51, 0.0  ;;  %v660_v54 = vpop.f32.mrb[3].mxu1 }
 0x35e   : > { %v663_v55 = vmax.f32 %v658_v21, 0.0 }
 0x35f   : > { %664 = vst [vmem:[%s319_s30] sm:$0xff] %v662_v53 }
 0x360   : > { %665 = vst [vmem:[%s319_s30 + $0x8] sm:$0xff] %v663_v55 }
 0x361   : > { %988 = shalt.err (!%p985_p1)
}
 0x362   : > { %s989_s5 = scalar_lea.hbm %s1540_s15, 256  ;;  %s993_s11 = scalar_lea.hbm %s1590_s6, 512 }
 0x363   : > { %p990_p6 = scmp.ne.s32.totalorder %s1540_s15, %s989_s5  ;;  %p994_p12 = scmp.lt.u32.totalorder %s1540_s15, %s1590_s6 }
 0x364   : > { %p995_p11 = scmp.lt.u32.totalorder %s993_s11, %s989_s5  ;;  %p997_p10 = scmp.lt.u32.totalorder %s989_s5, %s1540_s15 }
 0x365   : > { %p991_p8 = pnand %p990_p6, %p1611_p13 }
 0x366   : > { %p996_p0 = por %p995_p11, %p994_p12 }
 0x367   : > { %p992_p4 = pneg %p991_p8 }
 0x368   : > { %p998_p3 = por %p997_p10, %p996_p0 }
 0x36a   : > { %p999_p7 = pnand %p998_p3, %p992_p4 }
 0x36c   : > { %1002 = shalt.err (!%p999_p7)
}
 0x36d   : > { %819 = dma.vmem_to_hbm [thread:$0]  (%p1611_p13), %s1542_s26, 256, %s1540_s15, %s667_s25  }
 0x36e PF: > { %s693_s10 = sand.u32 1, %s1037_s21   ;;  %p1612_p9 = scmp.ne.s32.totalorder %s1599_s28, 0 }
 0x36f   : > { %p1613_p2 = scmp.ge.s32.totalorder %s1049_s24, 2  ;;  %s694_s29 = scalar_lea.sflag [#allocation4], %s693_s10 }
 0x371   : > { %p833_p5 = pnand %p1613_p2, %p1612_p9 }
 0x373   : > { %1032 = dma.done.wait (!%p833_p5), %s694_s29, 256  }
 0x374   : > { %1034 = vsyncadd (!%p833_p5), %s694_s29, 4294967040  ;;  %s1614_s19 = sld [smem:[#allocation13_spill]]  ;;  %s1615_s23 = sld [smem:[#allocation14_spill]] }
 0x375   : > { %p22_p1 = scmp.ge.s32.totalorder %s1158_s9, 4   ;;  %s1616_s21 = smov %s1041_s22 }
 0x376   : > { %s1618_s24 = smov %s1158_s9 }
 0x377   :  { %24 = sbr.rel (!%p22_p1) target bundleno = 9 (0x9), region = 106 }
 0x37a   : > { %s1617_s22 = smov %s1614_s19 }
 0x37e   :  { %699 = vsyncpa [#allocation3], 1 }
 0x37f   :  { %701 = vsyncpa [#allocation3 + $0x1], 1 }
 0x380   :  { %702 = vsyncpa [#allocation6], 1 }
 0x381   :  { %704 = vsyncpa [#allocation6 + $0x1], 1 }
 0x382   :  { %705 = vsyncpa [#allocation4], 1 }
 0x383   :  { %707 = vsyncpa [#allocation4 + $0x1], 1 }

</bundles_post_ra>
